<compile_context>
chip_gen: v6e
topology: v6e:2x2x1
jax: 0.10.0
libtpu: 0.0.40
codegen_flags: <defaults>
</compile_context>

<pallas_src>
import functools

import jax
import jax.numpy as jnp
from jax import lax
from jax.experimental import pallas as pl
from jax.experimental.pallas import tpu as pltpu

F_LORENZ = 8.0
_CHUNK = 128  # lanes processed per inner-loop iteration (one lane-dense tile)


# ----------------------------------------------------------------------------
# Pallas kernel: RK4 integration of Lorenz-95 in (x_dim, 128) lane-dense chunks
# ----------------------------------------------------------------------------
def _l95_edo(u, L):
    """Lorenz-95 tendency; u has shape (x_dim, chunk), f32, batch on lanes.

    dx_i/dt = (x_{i+1} - x_{i-2}) * x_{i-1} - x_i + F
    np/torch.roll semantics: roll(u, s, 0)[i] = u[(i - s) % L]; pltpu.roll
    wants non-negative static shifts, so shifts are taken mod L.  The three
    sublane rolls run on the XLU slot and overlap with the VALU mul/adds.

    NOTE: if a bundle dump shows the XLU slot saturating (12 multi-vreg rolls
    per RK4 step on 2 XLU ports), the next experiment is a halo layout
    ((L+3, chunk) scratch + statically shifted slices on the vld slot); not
    applied here since unverified slices may materialize VMEM copies.
    """
    x_p1 = pltpu.roll(u, (-1) % L, axis=0)   # x_{i+1}
    x_m2 = pltpu.roll(u, 2 % L, axis=0)      # x_{i-2}
    x_m1 = pltpu.roll(u, 1 % L, axis=0)      # x_{i-1}
    return (x_p1 - x_m2) * x_m1 - u + F_LORENZ


def _l95_rk4_kernel(x_ref, y_ref, *, n_steps, dt):
    """Integrate each (L, _CHUNK) chunk of the (cpb, L, _CHUNK) block."""
    cpb, L, _ = x_ref.shape
    half_dt = 0.5 * dt        # compile-time immediates, no runtime scalar math
    dt_over_6 = dt / 6.0

    def rk4_step(u):
        k1 = _l95_edo(u, L)
        k2 = _l95_edo(u + half_dt * k1, L)
        k3 = _l95_edo(u + half_dt * k2, L)
        k4 = _l95_edo(u + dt * k3, L)
        # (k1 + k4) + 2*(k2 + k3): one fewer vector multiply than k1+2k2+2k3+k4
        return u + dt_over_6 * ((k1 + k4) + 2.0 * (k2 + k3))

    def integrate(u):
        if n_steps <= 4:
            # small static Ndt: fully unroll for LLO scheduler visibility
            for _ in range(n_steps):
                u = rk4_step(u)
            return u
        # larger Ndt: 2x-unrolled counted loop (bounded live ranges)
        n2, rem = divmod(n_steps, 2)
        u = lax.fori_loop(0, n2, lambda _, v: rk4_step(rk4_step(v)), u)
        if rem:
            u = rk4_step(u)
        return u

    @pl.loop(0, cpb)
    def _(c):
        u = x_ref[c].astype(jnp.float32)           # (L, 128), math in f32
        y_ref[c] = integrate(u).astype(y_ref.dtype)


def l95_M(x, n_steps=1, dt=0.05, *, block_lanes=2048):
    """Lorenz-95 flow map (l95.M): `n_steps` RK4 steps of size `dt`.

    x: (batch, x_dim) -> (batch, x_dim).  The kernel works in a lane-dense
    (x_dim, 128) layout per chunk: batch -> lanes, state -> sublanes, so the
    periodic shifts are XLU sublane rotates and all loads/stores are unmasked.
    """
    B, L = x.shape
    if L % 8 != 0:
        # TODO(synk): pad/unpad the sublane (state) axis for x_dim % 8 != 0.
        raise ValueError(f"x_dim must be a multiple of 8 for the TPU kernel, got {L}")

    # Batch tiling: 128-lane chunks, several chunks per DMA block (amortizes the
    # ~0.35us per-grid-step overhead); when there is more than one chunk of work
    # keep >=2 grid blocks so the "parallel" axis can shard across both v7x TCs.
    n_chunks = pl.cdiv(B, _CHUNK)
    req_cpb = max(1, block_lanes // _CHUNK)
    cpb = max(1, min(req_cpb, pl.cdiv(n_chunks, 2)))
    nb = pl.cdiv(n_chunks, cpb)
    B_pad = nb * cpb * _CHUNK

    xp = x if B_pad == B else jnp.pad(x, ((0, B_pad - B), (0, 0)))
    # (B_pad, L) -> (nb*cpb, 128, L) [free reshape] -> (nb*cpb, L, 128):
    # one fused XLA relayout each way; every kernel chunk is then a contiguous
    # lane-dense (L, 128) tile and the per-block DMA is a single contiguous copy.
    xt = jnp.swapaxes(xp.reshape(nb * cpb, _CHUNK, L), 1, 2)

    kernel = functools.partial(_l95_rk4_kernel, n_steps=int(n_steps), dt=float(dt))
    yt = pl.pallas_call(
        kernel,
        out_shape=jax.ShapeDtypeStruct((nb * cpb, L, _CHUNK), x.dtype),
        grid=(nb,),
        in_specs=[pl.BlockSpec((cpb, L, _CHUNK), lambda i: (i, 0, 0))],
        out_specs=pl.BlockSpec((cpb, L, _CHUNK), lambda i: (i, 0, 0)),
        compiler_params=pltpu.CompilerParams(
            dimension_semantics=("parallel",),
        ),
    )(xt)

    return jnp.swapaxes(yt, 1, 2).reshape(B_pad, L)[:B]


# ----------------------------------------------------------------------------
# Gaussian parameter assembly (plain-JAX glue, identical to the PyTorch port)
# ----------------------------------------------------------------------------
def vec_to_inds(x_dim, vec_dim):
    """Indices of scale_tril coefficients, filled main diagonal first."""
    ldiag, d, c = x_dim, 0, 0
    inds = [[], []]
    for _ in range(vec_dim - x_dim):
        inds[0].append(c + d)
        inds[1].append(c)
        if c == ldiag - 1:
            ldiag += -1
            c = 0
            d += 1
        else:
            c += 1
    return inds


class LorenzMuCstLambdaCpdf:
    """JAX/Pallas port of Lorenz_mu_cst_Lambda_cpdf.

    forward(x, t) returns (loc, scale_tril): the parameters of the Gaussian
    conditional pdf N(loc = l95.M(x, Ndt, dt), scale_tril(scale_vec)) that the
    PyTorch module wraps in a MultivariateNormal.
    """

    def __init__(self, x_dim, vec_dim, Ndt=1, dt=0.05):
        if vec_dim < x_dim + 1:
            # vec_dim == x_dim would give an all-zero scale_tril (invalid
            # Cholesky factor) in the reference code; guard it explicitly.
            raise ValueError("vec_dim must be at least x_dim + 1")
        self.x_dim = x_dim
        self.vec_dim = vec_dim
        self.Ndt = Ndt
        self.dt = dt
        # nn.Parameter(torch.zeros(vec_dim - x_dim))
        self.scale_vec = jnp.zeros((vec_dim - x_dim,), jnp.float32)

    def _scale_tril(self):
        """(x_dim, x_dim) Cholesky factor built from scale_vec (batch-constant)."""
        x_dim, sv = self.x_dim, self.scale_vec
        vec_dim = x_dim + sv.shape[0]
        if vec_dim == x_dim + 1:
            return jnp.exp(sv[0]) * jnp.eye(x_dim, dtype=jnp.float32)
        rows, cols = vec_to_inds(x_dim, vec_dim)
        lbda = jnp.concatenate([jnp.exp(sv[:x_dim]), sv[x_dim:]])
        return jnp.zeros((x_dim, x_dim), jnp.float32).at[
            jnp.asarray(rows), jnp.asarray(cols)].set(lbda)

    def forward(self, x, t, *, materialize_batch_scale_tril=True):
        del t  # unused by the reference forward
        B, x_dim = x.shape
        assert x_dim == self.x_dim

        # loc = l95.M(x, Ndt, dt)  -- Pallas RK4 kernel
        loc = l95_M(x, self.Ndt, self.dt)

        st = self._scale_tril()
        if materialize_batch_scale_tril:
            # PyTorch parity: per-batch-element scale_tril.  Pass False if the
            # downstream MVN can consume the shared (x_dim, x_dim) factor -- the
            # (B, x_dim, x_dim) broadcast is B*x_dim^2*4 bytes of pure HBM write
            # bandwidth, far more than the RK4 kernel touches per sample.
            st = jnp.broadcast_to(st, (B, x_dim, x_dim))
        return loc, st


# ----------------------------------------------------------------------------
# Pure-JAX reference (for correctness checking only)
# ----------------------------------------------------------------------------
def _l95_M_ref(x, n_steps, dt):
    def edo(u):
        return ((jnp.roll(u, -1, -1) - jnp.roll(u, 2, -1)) * jnp.roll(u, 1, -1)
                - u + F_LORENZ)

    for _ in range(n_steps):
        k1 = edo(x)
        k2 = edo(x + 0.5 * dt * k1)
        k3 = edo(x + 0.5 * dt * k2)
        k4 = edo(x + dt * k3)
        x = x + dt / 6.0 * (k1 + 2.0 * k2 + 2.0 * k3 + k4)
    return x


if __name__ == "__main__":
    # canonical Lorenz-95 state size (40); batch 512 = 4 lane-chunks of 128 ->
    # 2 chunks per block x 2 parallel grid blocks (exercises both the inner
    # chunk loop and the megacore-parallel grid while staying small)
    B, x_dim = 512, 40
    Ndt, dt = 2, 0.05
    # scale_tril parametrized by main diagonal + first subdiagonal
    vec_dim = x_dim + x_dim + (x_dim - 1)

    key = jax.random.PRNGKey(0)
    x = 8.0 + jax.random.normal(key, (B, x_dim), jnp.float32)
    t = jnp.zeros((B, 1), jnp.float32)   # unused by forward; signature parity

    model = LorenzMuCstLambdaCpdf(x_dim, vec_dim, Ndt=Ndt, dt=dt)
    fwd = jax.jit(model.forward)
    loc, scale_tril = fwd(x, t)
    jax.block_until_ready((loc, scale_tril))

    # shape / finiteness / correctness vs pure-JAX Lorenz-95 RK4 reference
    assert loc.shape == (B, x_dim)
    assert scale_tril.shape == (B, x_dim, x_dim)
    assert bool(jnp.all(jnp.isfinite(loc))) and bool(jnp.all(jnp.isfinite(scale_tril)))
    loc_ref = _l95_M_ref(x, Ndt, dt)
    err = float(jnp.max(jnp.abs(loc - loc_ref)))
    assert bool(jnp.allclose(loc, loc_ref, rtol=1e-4, atol=1e-3)), (
        f"Pallas Lorenz-95 RK4 disagrees with JAX reference, max abs err = {err}")
    print("KERNEL_OK")
</pallas_src>

<mosaic_0001>
module attributes {stable_mosaic.version = 11 : i64} {
  func.func @_l95_rk4_kernel(%arg0: i32, %arg1: memref<2x40x128xf32, #tpu.memory_space<vmem>>, %arg2: memref<2x40x128xf32, #tpu.memory_space<vmem>>) attributes {dimension_semantics = [#tpu.dimension_semantics<parallel>], iteration_bounds = array<i64: 2>, scalar_prefetch = 0 : i64, scratch_operands = 0 : i64, tpu.core_type = #tpu.core_type<tc>, window_params = [{transform_indices = @transform_0, window_bounds = array<i64: 2, 40, 128>}, {transform_indices = @transform_1, window_bounds = array<i64: 2, 40, 128>}]} {
    %c0_i32 = arith.constant 0 : i32
    %c2_i32 = arith.constant 2 : i32
    %0 = arith.addi %c0_i32, %c2_i32 : i32
    %c1_i32 = arith.constant 1 : i32
    scf.for %arg3 = %c0_i32 to %0 step %c1_i32  : i32 {
      %c1_i32_1 = arith.constant 1 : i32
      %1 = arith.muli %arg3, %c1_i32_1 : i32
      %c0_i32_2 = arith.constant 0 : i32
      %2 = arith.addi %c0_i32_2, %1 : i32
      %3 = arith.index_cast %2 : i32 to index
      %c0 = arith.constant 0 : index
      %c0_3 = arith.constant 0 : index
      %4 = vector.load %arg1[%3, %c0, %c0_3] : memref<2x40x128xf32, #tpu.memory_space<vmem>>, vector<1x40x128xf32>
      %5 = vector.shape_cast %4 : vector<1x40x128xf32> to vector<40x128xf32>
      %c39_i32 = arith.constant 39 : i32
      %6 = tpu.dynamic_rotate %5 by %c39_i32 dim 0 : vector<40x128xf32>, i32 -> vector<40x128xf32>
      %c2_i32_4 = arith.constant 2 : i32
      %7 = tpu.dynamic_rotate %5 by %c2_i32_4 dim 0 : vector<40x128xf32>, i32 -> vector<40x128xf32>
      %c1_i32_5 = arith.constant 1 : i32
      %8 = tpu.dynamic_rotate %5 by %c1_i32_5 dim 0 : vector<40x128xf32>, i32 -> vector<40x128xf32>
      %9 = arith.subf %6, %7 : vector<40x128xf32>
      %10 = arith.mulf %9, %8 : vector<40x128xf32>
      %11 = arith.subf %10, %5 : vector<40x128xf32>
      %cst = arith.constant 8.000000e+00 : f32
      %12 = vector.broadcast %cst : f32 to vector<40x128xf32>
      %13 = arith.addf %11, %12 : vector<40x128xf32>
      %cst_6 = arith.constant 2.500000e-02 : f32
      %14 = vector.broadcast %cst_6 : f32 to vector<40x128xf32>
      %15 = arith.mulf %14, %13 : vector<40x128xf32>
      %16 = arith.addf %5, %15 : vector<40x128xf32>
      %c39_i32_7 = arith.constant 39 : i32
      %17 = tpu.dynamic_rotate %16 by %c39_i32_7 dim 0 : vector<40x128xf32>, i32 -> vector<40x128xf32>
      %c2_i32_8 = arith.constant 2 : i32
      %18 = tpu.dynamic_rotate %16 by %c2_i32_8 dim 0 : vector<40x128xf32>, i32 -> vector<40x128xf32>
      %c1_i32_9 = arith.constant 1 : i32
      %19 = tpu.dynamic_rotate %16 by %c1_i32_9 dim 0 : vector<40x128xf32>, i32 -> vector<40x128xf32>
      %20 = arith.subf %17, %18 : vector<40x128xf32>
      %21 = arith.mulf %20, %19 : vector<40x128xf32>
      %22 = arith.subf %21, %16 : vector<40x128xf32>
      %cst_10 = arith.constant 8.000000e+00 : f32
      %23 = vector.broadcast %cst_10 : f32 to vector<40x128xf32>
      %24 = arith.addf %22, %23 : vector<40x128xf32>
      %cst_11 = arith.constant 2.500000e-02 : f32
      %25 = vector.broadcast %cst_11 : f32 to vector<40x128xf32>
      %26 = arith.mulf %25, %24 : vector<40x128xf32>
      %27 = arith.addf %5, %26 : vector<40x128xf32>
      %c39_i32_12 = arith.constant 39 : i32
      %28 = tpu.dynamic_rotate %27 by %c39_i32_12 dim 0 : vector<40x128xf32>, i32 -> vector<40x128xf32>
      %c2_i32_13 = arith.constant 2 : i32
      %29 = tpu.dynamic_rotate %27 by %c2_i32_13 dim 0 : vector<40x128xf32>, i32 -> vector<40x128xf32>
      %c1_i32_14 = arith.constant 1 : i32
      %30 = tpu.dynamic_rotate %27 by %c1_i32_14 dim 0 : vector<40x128xf32>, i32 -> vector<40x128xf32>
      %31 = arith.subf %28, %29 : vector<40x128xf32>
      %32 = arith.mulf %31, %30 : vector<40x128xf32>
      %33 = arith.subf %32, %27 : vector<40x128xf32>
      %cst_15 = arith.constant 8.000000e+00 : f32
      %34 = vector.broadcast %cst_15 : f32 to vector<40x128xf32>
      %35 = arith.addf %33, %34 : vector<40x128xf32>
      %cst_16 = arith.constant 5.000000e-02 : f32
      %36 = vector.broadcast %cst_16 : f32 to vector<40x128xf32>
      %37 = arith.mulf %36, %35 : vector<40x128xf32>
      %38 = arith.addf %5, %37 : vector<40x128xf32>
      %c39_i32_17 = arith.constant 39 : i32
      %39 = tpu.dynamic_rotate %38 by %c39_i32_17 dim 0 : vector<40x128xf32>, i32 -> vector<40x128xf32>
      %c2_i32_18 = arith.constant 2 : i32
      %40 = tpu.dynamic_rotate %38 by %c2_i32_18 dim 0 : vector<40x128xf32>, i32 -> vector<40x128xf32>
      %c1_i32_19 = arith.constant 1 : i32
      %41 = tpu.dynamic_rotate %38 by %c1_i32_19 dim 0 : vector<40x128xf32>, i32 -> vector<40x128xf32>
      %42 = arith.subf %39, %40 : vector<40x128xf32>
      %43 = arith.mulf %42, %41 : vector<40x128xf32>
      %44 = arith.subf %43, %38 : vector<40x128xf32>
      %cst_20 = arith.constant 8.000000e+00 : f32
      %45 = vector.broadcast %cst_20 : f32 to vector<40x128xf32>
      %46 = arith.addf %44, %45 : vector<40x128xf32>
      %47 = arith.addf %13, %46 : vector<40x128xf32>
      %48 = arith.addf %24, %35 : vector<40x128xf32>
      %cst_21 = arith.constant 2.000000e+00 : f32
      %49 = vector.broadcast %cst_21 : f32 to vector<40x128xf32>
      %50 = arith.mulf %49, %48 : vector<40x128xf32>
      %51 = arith.addf %47, %50 : vector<40x128xf32>
      %cst_22 = arith.constant 0.00833333377 : f32
      %52 = vector.broadcast %cst_22 : f32 to vector<40x128xf32>
      %53 = arith.mulf %52, %51 : vector<40x128xf32>
      %54 = arith.addf %5, %53 : vector<40x128xf32>
      %c39_i32_23 = arith.constant 39 : i32
      %55 = tpu.dynamic_rotate %54 by %c39_i32_23 dim 0 : vector<40x128xf32>, i32 -> vector<40x128xf32>
      %c2_i32_24 = arith.constant 2 : i32
      %56 = tpu.dynamic_rotate %54 by %c2_i32_24 dim 0 : vector<40x128xf32>, i32 -> vector<40x128xf32>
      %c1_i32_25 = arith.constant 1 : i32
      %57 = tpu.dynamic_rotate %54 by %c1_i32_25 dim 0 : vector<40x128xf32>, i32 -> vector<40x128xf32>
      %58 = arith.subf %55, %56 : vector<40x128xf32>
      %59 = arith.mulf %58, %57 : vector<40x128xf32>
      %60 = arith.subf %59, %54 : vector<40x128xf32>
      %cst_26 = arith.constant 8.000000e+00 : f32
      %61 = vector.broadcast %cst_26 : f32 to vector<40x128xf32>
      %62 = arith.addf %60, %61 : vector<40x128xf32>
      %cst_27 = arith.constant 2.500000e-02 : f32
      %63 = vector.broadcast %cst_27 : f32 to vector<40x128xf32>
      %64 = arith.mulf %63, %62 : vector<40x128xf32>
      %65 = arith.addf %54, %64 : vector<40x128xf32>
      %c39_i32_28 = arith.constant 39 : i32
      %66 = tpu.dynamic_rotate %65 by %c39_i32_28 dim 0 : vector<40x128xf32>, i32 -> vector<40x128xf32>
      %c2_i32_29 = arith.constant 2 : i32
      %67 = tpu.dynamic_rotate %65 by %c2_i32_29 dim 0 : vector<40x128xf32>, i32 -> vector<40x128xf32>
      %c1_i32_30 = arith.constant 1 : i32
      %68 = tpu.dynamic_rotate %65 by %c1_i32_30 dim 0 : vector<40x128xf32>, i32 -> vector<40x128xf32>
      %69 = arith.subf %66, %67 : vector<40x128xf32>
      %70 = arith.mulf %69, %68 : vector<40x128xf32>
      %71 = arith.subf %70, %65 : vector<40x128xf32>
      %cst_31 = arith.constant 8.000000e+00 : f32
      %72 = vector.broadcast %cst_31 : f32 to vector<40x128xf32>
      %73 = arith.addf %71, %72 : vector<40x128xf32>
      %cst_32 = arith.constant 2.500000e-02 : f32
      %74 = vector.broadcast %cst_32 : f32 to vector<40x128xf32>
      %75 = arith.mulf %74, %73 : vector<40x128xf32>
      %76 = arith.addf %54, %75 : vector<40x128xf32>
      %c39_i32_33 = arith.constant 39 : i32
      %77 = tpu.dynamic_rotate %76 by %c39_i32_33 dim 0 : vector<40x128xf32>, i32 -> vector<40x128xf32>
      %c2_i32_34 = arith.constant 2 : i32
      %78 = tpu.dynamic_rotate %76 by %c2_i32_34 dim 0 : vector<40x128xf32>, i32 -> vector<40x128xf32>
      %c1_i32_35 = arith.constant 1 : i32
      %79 = tpu.dynamic_rotate %76 by %c1_i32_35 dim 0 : vector<40x128xf32>, i32 -> vector<40x128xf32>
      %80 = arith.subf %77, %78 : vector<40x128xf32>
      %81 = arith.mulf %80, %79 : vector<40x128xf32>
      %82 = arith.subf %81, %76 : vector<40x128xf32>
      %cst_36 = arith.constant 8.000000e+00 : f32
      %83 = vector.broadcast %cst_36 : f32 to vector<40x128xf32>
      %84 = arith.addf %82, %83 : vector<40x128xf32>
      %cst_37 = arith.constant 5.000000e-02 : f32
      %85 = vector.broadcast %cst_37 : f32 to vector<40x128xf32>
      %86 = arith.mulf %85, %84 : vector<40x128xf32>
      %87 = arith.addf %54, %86 : vector<40x128xf32>
      %c39_i32_38 = arith.constant 39 : i32
      %88 = tpu.dynamic_rotate %87 by %c39_i32_38 dim 0 : vector<40x128xf32>, i32 -> vector<40x128xf32>
      %c2_i32_39 = arith.constant 2 : i32
      %89 = tpu.dynamic_rotate %87 by %c2_i32_39 dim 0 : vector<40x128xf32>, i32 -> vector<40x128xf32>
      %c1_i32_40 = arith.constant 1 : i32
      %90 = tpu.dynamic_rotate %87 by %c1_i32_40 dim 0 : vector<40x128xf32>, i32 -> vector<40x128xf32>
      %91 = arith.subf %88, %89 : vector<40x128xf32>
      %92 = arith.mulf %91, %90 : vector<40x128xf32>
      %93 = arith.subf %92, %87 : vector<40x128xf32>
      %cst_41 = arith.constant 8.000000e+00 : f32
      %94 = vector.broadcast %cst_41 : f32 to vector<40x128xf32>
      %95 = arith.addf %93, %94 : vector<40x128xf32>
      %96 = arith.addf %62, %95 : vector<40x128xf32>
      %97 = arith.addf %73, %84 : vector<40x128xf32>
      %cst_42 = arith.constant 2.000000e+00 : f32
      %98 = vector.broadcast %cst_42 : f32 to vector<40x128xf32>
      %99 = arith.mulf %98, %97 : vector<40x128xf32>
      %100 = arith.addf %96, %99 : vector<40x128xf32>
      %cst_43 = arith.constant 0.00833333377 : f32
      %101 = vector.broadcast %cst_43 : f32 to vector<40x128xf32>
      %102 = arith.mulf %101, %100 : vector<40x128xf32>
      %103 = arith.addf %54, %102 : vector<40x128xf32>
      %104 = arith.index_cast %2 : i32 to index
      %c0_44 = arith.constant 0 : index
      %c0_45 = arith.constant 0 : index
      %105 = vector.load %arg2[%104, %c0_44, %c0_45] : memref<2x40x128xf32, #tpu.memory_space<vmem>>, vector<1x40x128xf32>
      %106 = vector.shape_cast %105 : vector<1x40x128xf32> to vector<40x128xf32>
      %107 = vector.shape_cast %103 : vector<40x128xf32> to vector<1x40x128xf32>
      tpu.vector_store %arg2[%104, %c0_44, %c0_45], %107 {strides = array<i32>} : memref<2x40x128xf32, #tpu.memory_space<vmem>>, vector<1x40x128xf32>,
    }
    %c2_i32_0 = arith.constant 2 : i32
    return
  }
  func.func @transform_0(%arg0: i32) -> (i32, i32, i32) {
    %c0_i32 = arith.constant 0 : i32
    %c0_i32_0 = arith.constant 0 : i32
    %c0_i32_1 = arith.constant 0 : i32
    return %arg0, %c0_i32, %c0_i32_0 : i32, i32, i32
  }
  func.func @transform_1(%arg0: i32) -> (i32, i32, i32) {
    %c0_i32 = arith.constant 0 : i32
    %c0_i32_0 = arith.constant 0 : i32
    %c0_i32_1 = arith.constant 0 : i32
    return %arg0, %c0_i32, %c0_i32_0 : i32, i32, i32
  }
}

</mosaic_0001>

<bundles_post_ra>
// kernel: forward.1
= control target key start
LH: loop header
LB: loop body
LE: loop exit
PB: predicated region body
PF: predicated region fallthrough
CT: control target
= control target key end

     0   :  { %s790_s6 = smov 0   ;;  %s1251_s0 = inlined_call_operand.vmem [shape: f32[4,40,128], index: 0, kind: input, shape index: {}]   ;;  %s1252_s1 = inlined_call_operand.vmem [shape: f32[4,40,128], index: 1, kind: output, shape index: {}]  }
   0x1 LB: > { %s736_s7 = sadd.s32 4294967295, %s774_s6   ;;  %p740_p0 = scmp.ge.s32.totalorder %s774_s6, 1  ;;  %s774_s6 = sphi %s790_s6, %s11_s6  }
   0x2   : > { %p89_p1 = scmp.lt.s32.totalorder %s774_s6, 3 }
   0x4   : > { %p90_p2 = pnand %p740_p0, %p89_p1 }
   0x5   : > { %s741_s8 = sshll.u32 (!%p90_p2), %s736_s7, 1  ;;  %s808_s16 = smov (!%p90_p2), 0  }
   0x6   : > { %93 = sbr.rel (%p90_p2) target bundleno = 179 (0xb3), region = 24  ;;  %p112_p3 = scmp.lt.s32.totalorder (!%p90_p2), %s741_s8, 3 }
   0xb   : > { %s1254_s8 = smov (!%p112_p3, %s741_s8), 3 }
   0xc   : > { %s747_s9 = smul.u32 40, %s1254_s8 }
   0xe   : > { %s801_s12 = scalar_lea.vmem %s1251_s0, %s747_s9  ;;  %s806_s15 = scalar_lea.vmem %s1252_s1, %s747_s9 }
   0xf LB: >> { %v143_v0 = vlaneseq  ;;  %s131_s17 = smul.u32 40, %s778_s16  ;;  %s130_s16 = sadd.s32 1, %s778_s16   ;;  %s778_s16 = sphi %s808_s16, %s130_s16  }
  0x10   : >> { %p127_p4 = scmp.ge.s32.totalorder %s130_s16, 2  }
  0x11   : >> { %v814_v1 = vshrl.u32 %v143_v0, 7  ;;  %s132_s18 = scalar_lea.vmem %s801_s12, %s131_s17  ;;  %s663_s19 = scalar_lea.vmem %s806_s15, %s131_s17 }
  0x12   : >> { %v819_v2 = vld [vmem:[%s132_s18] sm:$0xff]  ;;  %v821_v3 = vld [vmem:[%s132_s18 + $0x8] sm:$0xff]  ;;  %v823_v4 = vld [vmem:[%s132_s18 + $0x10] sm:$0xff] }
  0x13   : >> { %vm145_vm0 = vcmp.lt.s32.totalorder %v814_v1, 7  ;;  %vm156_vm1 = vcmp.lt.s32.totalorder %v814_v1, 2  ;;  %vm167_vm2 = vcmp.lt.s32.totalorder %v814_v1, 1  ;;  %v828_v5 = vld [vmem:[%s132_s18 + $0x18] sm:$0xff]  ;;  %v830_v6 = vld [vmem:[%s132_s18 + $0x20] sm:$0xff]  ;;  %v138_v7 = vrot.slane %v819_v2, 1 }
  0x14   : >> { %v139_v8 = vrot.slane %v821_v3, 1  ;;  %v140_v9 = vrot.slane %v823_v4, 1  ;;  %v151_v10 = vrot.slane %v819_v2, 6  ;;  %v141_v11 = vrot.slane %v828_v5, 1 }
  0x15   : >> { %v142_v12 = vrot.slane %v830_v6, 1  ;;  %v152_v13 = vrot.slane %v821_v3, 6  ;;  %v153_v14 = vrot.slane %v823_v4, 6  ;;  %v154_v17 = vrot.slane %v828_v5, 6 }
  0x16   : >> { %v148_v15 = vsel %vm145_vm0, %v139_v8, %v140_v9  ;;  %v149_v16 = vsel %vm145_vm0, %v138_v7, %v139_v8  ;;  %v155_v18 = vrot.slane %v830_v6, 6  ;;  %v147_v20 = vsel %vm145_vm0, %v140_v9, %v141_v11 }
  0x17   : >> { %v146_v19 = vsel %vm145_vm0, %v141_v11, %v142_v12  ;;  %v150_v21 = vsel %vm145_vm0, %v142_v12, %v138_v7  ;;  %v159_v22 = vsel %vm156_vm1, %v152_v13, %v153_v14  ;;  %v158_v24 = vsel %vm156_vm1, %v153_v14, %v154_v17 }
  0x18   : >> { %v157_v23 = vsel %vm156_vm1, %v154_v17, %v155_v18  ;;  %v160_v25 = vsel %vm156_vm1, %v151_v10, %v152_v13  ;;  %v161_v26 = vsel %vm156_vm1, %v155_v18, %v151_v10  ;;  %v162_v27 = vrot.slane %v819_v2, 7 }
  0x19   : >> { %v163_v28 = vrot.slane %v821_v3, 7  ;;  %v164_v29 = vrot.slane %v823_v4, 7  ;;  %v165_v30 = vrot.slane %v828_v5, 7  ;;  %v166_v31 = vrot.slane %v830_v6, 7 }
  0x1a   : >> { %v173_v32 = vsub.f32 %v149_v16, %v161_v26  ;;  %v174_v33 = vsub.f32 %v148_v15, %v160_v25  ;;  %v175_v34 = vsub.f32 %v147_v20, %v159_v22  ;;  %v176_v38 = vsub.f32 %v146_v19, %v158_v24 }
  0x1b   : >> { %v169_v35 = vsel %vm167_vm2, %v164_v29, %v165_v30  ;;  %v170_v36 = vsel %vm167_vm2, %v163_v28, %v164_v29  ;;  %v171_v37 = vsel %vm167_vm2, %v162_v27, %v163_v28  ;;  %v168_v39 = vsel %vm167_vm2, %v165_v30, %v166_v31 }
  0x1c   : >> { %v172_v40 = vsel %vm167_vm2, %v166_v31, %v162_v27  ;;  %v177_v41 = vsub.f32 %v150_v21, %v157_v23  ;;  %v179_v42 = vmul.f32 %v174_v33, %v171_v37  ;;  %v180_v44 = vmul.f32 %v175_v34, %v170_v36 }
  0x1d   : >> { %v178_v43 = vmul.f32 %v173_v32, %v172_v40  ;;  %v181_v45 = vmul.f32 %v176_v38, %v169_v35 }
  0x1e   : >> { %v182_v46 = vmul.f32 %v177_v41, %v168_v39  ;;  %v184_v47 = vsub.f32 %v179_v42, %v821_v3  ;;  %v185_v49 = vsub.f32 %v180_v44, %v823_v4 }
  0x1f   : >> { %v183_v48 = vsub.f32 %v178_v43, %v819_v2  ;;  %v186_v50 = vsub.f32 %v181_v45, %v828_v5 }
  0x20   : >> { %v187_v51 = vsub.f32 %v182_v46, %v830_v6  ;;  %v882_v52 = vadd.f32 8.0, %v184_v47  ;;  %v886_v54 = vadd.f32 8.0, %v185_v49 }
  0x21   : >> { %v884_v53 = vadd.f32 8.0, %v183_v48  ;;  %v888_v55 = vadd.f32 8.0, %v186_v50 }
  0x22   : >> { %v890_v56 = vadd.f32 8.0, %v187_v51  ;;  %v194_v57 = vmul.f32 0.025, %v882_v52  ;;  %v195_v59 = vmul.f32 0.025, %v886_v54 }
  0x23   : >> { %v193_v58 = vmul.f32 0.025, %v884_v53  ;;  %v196_v60 = vmul.f32 0.025, %v888_v55 }
  0x24   : >> { %v197_v61 = vmul.f32 0.025, %v890_v56  ;;  %v199_v62 = vadd.f32 %v194_v57, %v821_v3  ;;  %v200_v0 = vadd.f32 %v195_v59, %v823_v4 }
  0x25   : >> { %v198_v63 = vadd.f32 %v193_v58, %v819_v2  ;;  %v201_v7 = vadd.f32 %v196_v60, %v828_v5 }
  0x26   : >> { %v202_v8 = vadd.f32 %v197_v61, %v830_v6  ;;  %v204_v9 = vrot.slane %v199_v62, 1  ;;  %v214_v10 = vrot.slane %v199_v62, 6  ;;  %v224_v11 = vrot.slane %v199_v62, 7 }
  0x27   : >> { %v203_v12 = vrot.slane %v198_v63, 1  ;;  %v205_v13 = vrot.slane %v200_v0, 1  ;;  %v206_v14 = vrot.slane %v201_v7, 1  ;;  %v213_v15 = vrot.slane %v198_v63, 6 }
  0x28   : >> { %v207_v16 = vrot.slane %v202_v8, 1  ;;  %v215_v17 = vrot.slane %v200_v0, 6  ;;  %v216_v18 = vrot.slane %v201_v7, 6  ;;  %v217_v19 = vrot.slane %v202_v8, 6 }
  0x29   : >> { %v209_v20 = vsel %vm145_vm0, %v205_v13, %v206_v14  ;;  %v210_v21 = vsel %vm145_vm0, %v204_v9, %v205_v13  ;;  %v211_v22 = vsel %vm145_vm0, %v203_v12, %v204_v9  ;;  %v221_v23 = vsel %vm156_vm1, %v213_v15, %v214_v10 }
  0x2a   : >> { %v208_v24 = vsel %vm145_vm0, %v206_v14, %v207_v16  ;;  %v212_v25 = vsel %vm145_vm0, %v207_v16, %v203_v12  ;;  %v218_v26 = vsel %vm156_vm1, %v216_v18, %v217_v19  ;;  %v219_v27 = vsel %vm156_vm1, %v215_v17, %v216_v18 }
  0x2b   : >> { %v220_v28 = vsel %vm156_vm1, %v214_v10, %v215_v17  ;;  %v222_v29 = vsel %vm156_vm1, %v217_v19, %v213_v15  ;;  %v223_v30 = vrot.slane %v198_v63, 7  ;;  %v225_v31 = vrot.slane %v200_v0, 7 }
  0x2c   : >> { %v226_v32 = vrot.slane %v201_v7, 7  ;;  %v227_v33 = vrot.slane %v202_v8, 7  ;;  %v233_v34 = vsub.f32 %v211_v22, %v222_v29  ;;  %v234_v35 = vsub.f32 %v210_v21, %v221_v23 }
  0x2d   : >> { %v230_v36 = vsel %vm167_vm2, %v224_v11, %v225_v31  ;;  %v231_v37 = vsel %vm167_vm2, %v223_v30, %v224_v11  ;;  %v235_v38 = vsub.f32 %v209_v20, %v220_v28  ;;  %v236_v39 = vsub.f32 %v208_v24, %v219_v27 }
  0x2e   : >> { %v228_v40 = vsel %vm167_vm2, %v226_v32, %v227_v33  ;;  %v229_v41 = vsel %vm167_vm2, %v225_v31, %v226_v32  ;;  %v232_v42 = vsel %vm167_vm2, %v227_v33, %v223_v30  ;;  %v237_v43 = vsub.f32 %v212_v25, %v218_v26 }
  0x2f   : >> { %v238_v44 = vmul.f32 %v233_v34, %v232_v42  ;;  %v239_v45 = vmul.f32 %v234_v35, %v231_v37  ;;  %v240_v46 = vmul.f32 %v235_v38, %v230_v36  ;;  %v241_v47 = vmul.f32 %v236_v39, %v229_v41 }
  0x30   : >> { %v242_v48 = vmul.f32 %v237_v43, %v228_v40 }
  0x31   : >> { %v243_v49 = vsub.f32 %v238_v44, %v198_v63  ;;  %v244_v50 = vsub.f32 %v239_v45, %v199_v62  ;;  %v245_v51 = vsub.f32 %v240_v46, %v200_v0  ;;  %v246_v57 = vsub.f32 %v241_v47, %v201_v7 }
  0x32   : >> { %v247_v58 = vsub.f32 %v242_v48, %v202_v8 }
  0x33   : >> { %v932_v59 = vadd.f32 8.0, %v243_v49  ;;  %v934_v60 = vadd.f32 8.0, %v244_v50  ;;  %v936_v61 = vadd.f32 8.0, %v245_v51  ;;  %v938_v9 = vadd.f32 8.0, %v246_v57 }
  0x34   : >> { %v940_v10 = vadd.f32 8.0, %v247_v58 }
  0x35   : >> { %v253_v11 = vmul.f32 0.025, %v932_v59  ;;  %v254_v12 = vmul.f32 0.025, %v934_v60  ;;  %v255_v63 = vmul.f32 0.025, %v936_v61 }
  0x36   : >> { %v256_v62 = vmul.f32 0.025, %v938_v9  ;;  %v257_v0 = vmul.f32 0.025, %v940_v10 }
  0x37   : >> { %v258_v7 = vadd.f32 %v253_v11, %v819_v2  ;;  %v259_v8 = vadd.f32 %v254_v12, %v821_v3  ;;  %v260_v13 = vadd.f32 %v255_v63, %v823_v4 }
  0x38   : >> { %v261_v14 = vadd.f32 %v256_v62, %v828_v5  ;;  %v262_v15 = vadd.f32 %v257_v0, %v830_v6 }
  0x39   : >> { %v263_v16 = vrot.slane %v258_v7, 1  ;;  %v264_v17 = vrot.slane %v259_v8, 1  ;;  %v265_v18 = vrot.slane %v260_v13, 1  ;;  %v273_v19 = vrot.slane %v258_v7, 6 }
  0x3a   : >> { %v266_v20 = vrot.slane %v261_v14, 1  ;;  %v267_v21 = vrot.slane %v262_v15, 1  ;;  %v274_v22 = vrot.slane %v259_v8, 6  ;;  %v275_v23 = vrot.slane %v260_v13, 6 }
  0x3b   : >> { %v270_v24 = vsel %vm145_vm0, %v264_v17, %v265_v18  ;;  %v271_v25 = vsel %vm145_vm0, %v263_v16, %v264_v17  ;;  %v276_v26 = vrot.slane %v261_v14, 6  ;;  %v277_v27 = vrot.slane %v262_v15, 6 }
  0x3c   : >> { %v268_v28 = vsel %vm145_vm0, %v266_v20, %v267_v21  ;;  %v269_v29 = vsel %vm145_vm0, %v265_v18, %v266_v20  ;;  %v272_v30 = vsel %vm145_vm0, %v267_v21, %v263_v16  ;;  %v280_v31 = vsel %vm156_vm1, %v274_v22, %v275_v23 }
  0x3d   : >> { %v278_v32 = vsel %vm156_vm1, %v276_v26, %v277_v27  ;;  %v279_v33 = vsel %vm156_vm1, %v275_v23, %v276_v26  ;;  %v281_v34 = vsel %vm156_vm1, %v273_v19, %v274_v22  ;;  %v282_v35 = vsel %vm156_vm1, %v277_v27, %v273_v19 }
  0x3e   : >> { %v283_v36 = vrot.slane %v258_v7, 7  ;;  %v284_v37 = vrot.slane %v259_v8, 7  ;;  %v285_v38 = vrot.slane %v260_v13, 7  ;;  %v286_v39 = vrot.slane %v261_v14, 7 }
  0x3f   : >> { %v287_v40 = vrot.slane %v262_v15, 7  ;;  %v293_v41 = vsub.f32 %v271_v25, %v282_v35  ;;  %v294_v42 = vsub.f32 %v270_v24, %v281_v34  ;;  %v295_v43 = vsub.f32 %v269_v29, %v280_v31 }
  0x40   : >> { %v289_v44 = vsel %vm167_vm2, %v285_v38, %v286_v39  ;;  %v290_v45 = vsel %vm167_vm2, %v284_v37, %v285_v38  ;;  %v291_v46 = vsel %vm167_vm2, %v283_v36, %v284_v37  ;;  %v296_v47 = vsub.f32 %v268_v28, %v279_v33 }
  0x41   : >> { %v288_v48 = vsel %vm167_vm2, %v286_v39, %v287_v40  ;;  %v292_v49 = vsel %vm167_vm2, %v287_v40, %v283_v36  ;;  %v297_v50 = vsub.f32 %v272_v30, %v278_v32  ;;  %v299_v51 = vmul.f32 %v294_v42, %v291_v46 }
  0x42   : >> { %v298_v57 = vmul.f32 %v293_v41, %v292_v49  ;;  %v300_v58 = vmul.f32 %v295_v43, %v290_v45  ;;  %v301_v11 = vmul.f32 %v296_v47, %v289_v44 }
  0x43   : >> { %v302_v12 = vmul.f32 %v297_v50, %v288_v48  ;;  %v304_v63 = vsub.f32 %v299_v51, %v259_v8 }
  0x44   : >> { %v303_v62 = vsub.f32 %v298_v57, %v258_v7  ;;  %v305_v0 = vsub.f32 %v300_v58, %v260_v13  ;;  %v306_v16 = vsub.f32 %v301_v11, %v261_v14 }
  0x45   : >> { %v307_v17 = vsub.f32 %v302_v12, %v262_v15  ;;  %v309_v18 = vadd.f32 8.0, %v304_v63 }
  0x46   : >> { %v308_v19 = vadd.f32 8.0, %v303_v62  ;;  %v310_v20 = vadd.f32 8.0, %v305_v0  ;;  %v311_v21 = vadd.f32 8.0, %v306_v16 }
  0x47   : >> { %v312_v22 = vadd.f32 8.0, %v307_v17  ;;  %v314_v23 = vmul.f32 0.05, %v309_v18  ;;  %v379_v27 = vadd.f32 %v309_v18, %v934_v60 }
  0x48   : >> { %v313_v24 = vmul.f32 0.05, %v308_v19  ;;  %v315_v25 = vmul.f32 0.05, %v310_v20  ;;  %v316_v26 = vmul.f32 0.05, %v311_v21  ;;  %v378_v8 = vadd.f32 %v308_v19, %v932_v59 }
  0x49   : >> { %v317_v28 = vmul.f32 0.05, %v312_v22  ;;  %v319_v29 = vadd.f32 %v314_v23, %v821_v3  ;;  %v380_v7 = vadd.f32 %v310_v20, %v936_v61  ;;  %v381_v30 = vadd.f32 %v311_v21, %v938_v9 }
  0x4a   : >> { %v318_v13 = vadd.f32 %v313_v24, %v819_v2  ;;  %v320_v14 = vadd.f32 %v315_v25, %v823_v4  ;;  %v321_v15 = vadd.f32 %v316_v26, %v828_v5  ;;  %v382_v26 = vadd.f32 %v312_v22, %v940_v10 }
  0x4b   : >> { %v322_v31 = vadd.f32 %v317_v28, %v830_v6  ;;  %v324_v32 = vrot.slane %v319_v29, 1  ;;  %v334_v33 = vrot.slane %v319_v29, 6  ;;  %v344_v60 = vrot.slane %v319_v29, 7 }
  0x4c   : >> { %v323_v34 = vrot.slane %v318_v13, 1  ;;  %v325_v35 = vrot.slane %v320_v14, 1  ;;  %v326_v36 = vrot.slane %v321_v15, 1  ;;  %v333_v37 = vrot.slane %v318_v13, 6 }
  0x4d   : >> { %v327_v59 = vrot.slane %v322_v31, 1  ;;  %v335_v38 = vrot.slane %v320_v14, 6  ;;  %v336_v61 = vrot.slane %v321_v15, 6  ;;  %v337_v39 = vrot.slane %v322_v31, 6 }
  0x4e   : >> { %v329_v40 = vsel %vm145_vm0, %v325_v35, %v326_v36  ;;  %v330_v41 = vsel %vm145_vm0, %v324_v32, %v325_v35  ;;  %v331_v9 = vsel %vm145_vm0, %v323_v34, %v324_v32  ;;  %v341_v42 = vsel %vm156_vm1, %v333_v37, %v334_v33 }
  0x4f   : >> { %v328_v43 = vsel %vm145_vm0, %v326_v36, %v327_v59  ;;  %v332_v44 = vsel %vm145_vm0, %v327_v59, %v323_v34  ;;  %v338_v45 = vsel %vm156_vm1, %v336_v61, %v337_v39  ;;  %v339_v46 = vsel %vm156_vm1, %v335_v38, %v336_v61 }
  0x50   : >> { %v340_v47 = vsel %vm156_vm1, %v334_v33, %v335_v38  ;;  %v342_v48 = vsel %vm156_vm1, %v337_v39, %v333_v37  ;;  %v343_v49 = vrot.slane %v318_v13, 7  ;;  %v345_v50 = vrot.slane %v320_v14, 7 }
  0x51   : >> { %v346_v51 = vrot.slane %v321_v15, 7  ;;  %v347_v57 = vrot.slane %v322_v31, 7  ;;  %v353_v58 = vsub.f32 %v331_v9, %v342_v48  ;;  %v354_v11 = vsub.f32 %v330_v41, %v341_v42 }
  0x52   : >> { %v350_v12 = vsel %vm167_vm2, %v344_v60, %v345_v50  ;;  %v351_v63 = vsel %vm167_vm2, %v343_v49, %v344_v60  ;;  %v355_v62 = vsub.f32 %v329_v40, %v340_v47  ;;  %v356_v0 = vsub.f32 %v328_v43, %v339_v46 }
  0x53   : >> { %v348_v16 = vsel %vm167_vm2, %v346_v51, %v347_v57  ;;  %v349_v17 = vsel %vm167_vm2, %v345_v50, %v346_v51  ;;  %v352_v18 = vsel %vm167_vm2, %v347_v57, %v343_v49  ;;  %v357_v19 = vsub.f32 %v332_v44, %v338_v45 }
  0x54   : >> { %v358_v20 = vmul.f32 %v353_v58, %v352_v18  ;;  %v359_v21 = vmul.f32 %v354_v11, %v351_v63  ;;  %v360_v23 = vmul.f32 %v355_v62, %v350_v12  ;;  %v361_v24 = vmul.f32 %v356_v0, %v349_v17 }
  0x55   : >> { %v362_v25 = vmul.f32 %v357_v19, %v348_v16  ;;  %v383_v28 = vmul.f32 2.0, %v378_v8  ;;  %v384_v36 = vmul.f32 2.0, %v379_v27  ;;  %v385_v37 = vmul.f32 2.0, %v380_v7 }
  0x56   : >> { %v363_v32 = vsub.f32 %v358_v20, %v318_v13  ;;  %v364_v33 = vsub.f32 %v359_v21, %v319_v29  ;;  %v365_v60 = vsub.f32 %v360_v23, %v320_v14  ;;  %v366_v34 = vsub.f32 %v361_v24, %v321_v15 }
  0x57   : >> { %v367_v35 = vsub.f32 %v362_v25, %v322_v31  ;;  %v386_v59 = vmul.f32 2.0, %v381_v30  ;;  %v387_v9 = vmul.f32 2.0, %v382_v26 }
  0x58   : >> { %v368_v38 = vadd.f32 8.0, %v363_v32  ;;  %v369_v61 = vadd.f32 8.0, %v364_v33  ;;  %v370_v39 = vadd.f32 8.0, %v365_v60  ;;  %v371_v40 = vadd.f32 8.0, %v366_v34 }
  0x59   : >> { %v372_v41 = vadd.f32 8.0, %v367_v35 }
  0x5a   : >> { %v373_v42 = vadd.f32 %v368_v38, %v884_v53  ;;  %v374_v43 = vadd.f32 %v369_v61, %v882_v52  ;;  %v375_v10 = vadd.f32 %v370_v39, %v886_v54  ;;  %v376_v22 = vadd.f32 %v371_v40, %v888_v55 }
  0x5b   : >> { %v377_v29 = vadd.f32 %v372_v41, %v890_v56 }
  0x5c   : >> { %v388_v8 = vadd.f32 %v383_v28, %v373_v42  ;;  %v389_v27 = vadd.f32 %v384_v36, %v374_v43  ;;  %v390_v7 = vadd.f32 %v385_v37, %v375_v10  ;;  %v391_v13 = vadd.f32 %v386_v59, %v376_v22 }
  0x5d   : >> { %v392_v14 = vadd.f32 %v387_v9, %v377_v29 }
  0x5e   : >> { %v393_v15 = vmul.f32 0.008333334, %v388_v8  ;;  %v394_v30 = vmul.f32 0.008333334, %v389_v27  ;;  %v395_v31 = vmul.f32 0.008333334, %v390_v7 }
  0x5f   : >> { %v396_v44 = vmul.f32 0.008333334, %v391_v13  ;;  %v397_v45 = vmul.f32 0.008333334, %v392_v14 }
  0x60   : >> { %v1028_v53 = vadd.f32 %v393_v15, %v819_v2  ;;  %v1031_v52 = vadd.f32 %v394_v30, %v821_v3  ;;  %v1034_v54 = vadd.f32 %v395_v31, %v823_v4 }
  0x61   : >> { %v1037_v55 = vadd.f32 %v396_v44, %v828_v5  ;;  %v1040_v56 = vadd.f32 %v397_v45, %v830_v6 }
  0x62   : >> { %v403_v46 = vrot.slane %v1028_v53, 1  ;;  %v404_v47 = vrot.slane %v1031_v52, 1  ;;  %v405_v48 = vrot.slane %v1034_v54, 1  ;;  %v413_v2 = vrot.slane %v1028_v53, 6 }
  0x63   : >> { %v406_v3 = vrot.slane %v1037_v55, 1  ;;  %v407_v49 = vrot.slane %v1040_v56, 1  ;;  %v414_v4 = vrot.slane %v1031_v52, 6  ;;  %v415_v5 = vrot.slane %v1034_v54, 6 }
  0x64   : >> { %v410_v6 = vsel %vm145_vm0, %v404_v47, %v405_v48  ;;  %v411_v50 = vsel %vm145_vm0, %v403_v46, %v404_v47  ;;  %v416_v51 = vrot.slane %v1037_v55, 6  ;;  %v417_v57 = vrot.slane %v1040_v56, 6 }
  0x65   : >> { %v408_v58 = vsel %vm145_vm0, %v406_v3, %v407_v49  ;;  %v409_v11 = vsel %vm145_vm0, %v405_v48, %v406_v3  ;;  %v412_v12 = vsel %vm145_vm0, %v407_v49, %v403_v46  ;;  %v420_v63 = vsel %vm156_vm1, %v414_v4, %v415_v5 }
  0x66   : >> { %v418_v62 = vsel %vm156_vm1, %v416_v51, %v417_v57  ;;  %v419_v0 = vsel %vm156_vm1, %v415_v5, %v416_v51  ;;  %v421_v16 = vsel %vm156_vm1, %v413_v2, %v414_v4  ;;  %v422_v17 = vsel %vm156_vm1, %v417_v57, %v413_v2 }
  0x67   : >> { %v423_v18 = vrot.slane %v1028_v53, 7  ;;  %v424_v19 = vrot.slane %v1031_v52, 7  ;;  %v425_v20 = vrot.slane %v1034_v54, 7  ;;  %v426_v21 = vrot.slane %v1037_v55, 7 }
  0x68   : >> { %v427_v23 = vrot.slane %v1040_v56, 7  ;;  %v433_v24 = vsub.f32 %v411_v50, %v422_v17  ;;  %v434_v25 = vsub.f32 %v410_v6, %v421_v16  ;;  %v435_v26 = vsub.f32 %v409_v11, %v420_v63 }
  0x69   : >> { %v429_v28 = vsel %vm167_vm2, %v425_v20, %v426_v21  ;;  %v430_v32 = vsel %vm167_vm2, %v424_v19, %v425_v20  ;;  %v431_v33 = vsel %vm167_vm2, %v423_v18, %v424_v19  ;;  %v436_v60 = vsub.f32 %v408_v58, %v419_v0 }
  0x6a   : >> { %v428_v34 = vsel %vm167_vm2, %v426_v21, %v427_v23  ;;  %v432_v35 = vsel %vm167_vm2, %v427_v23, %v423_v18  ;;  %v437_v36 = vsub.f32 %v412_v12, %v418_v62  ;;  %v439_v37 = vmul.f32 %v434_v25, %v431_v33 }
  0x6b   : >> { %v438_v59 = vmul.f32 %v433_v24, %v432_v35  ;;  %v440_v38 = vmul.f32 %v435_v26, %v430_v32  ;;  %v441_v61 = vmul.f32 %v436_v60, %v429_v28 }
  0x6c   : >> { %v442_v39 = vmul.f32 %v437_v36, %v428_v34  ;;  %v444_v40 = vsub.f32 %v439_v37, %v1031_v52 }
  0x6d   : >> { %v443_v41 = vsub.f32 %v438_v59, %v1028_v53  ;;  %v445_v9 = vsub.f32 %v440_v38, %v1034_v54  ;;  %v446_v42 = vsub.f32 %v441_v61, %v1037_v55 }
  0x6e   : >> { %v447_v43 = vsub.f32 %v442_v39, %v1040_v56  ;;  %v1092_v10 = vadd.f32 8.0, %v444_v40 }
  0x6f   : >> { %v1094_v22 = vadd.f32 8.0, %v443_v41  ;;  %v1096_v29 = vadd.f32 8.0, %v445_v9  ;;  %v1098_v8 = vadd.f32 8.0, %v446_v42 }
  0x70   : >> { %v1100_v27 = vadd.f32 8.0, %v447_v43  ;;  %v454_v7 = vmul.f32 0.025, %v1092_v10 }
  0x71   : >> { %v453_v13 = vmul.f32 0.025, %v1094_v22  ;;  %v455_v14 = vmul.f32 0.025, %v1096_v29  ;;  %v456_v15 = vmul.f32 0.025, %v1098_v8 }
  0x72   : >> { %v457_v30 = vmul.f32 0.025, %v1100_v27  ;;  %v459_v31 = vadd.f32 %v454_v7, %v1031_v52 }
  0x73   : >> { %v458_v44 = vadd.f32 %v453_v13, %v1028_v53  ;;  %v460_v45 = vadd.f32 %v455_v14, %v1034_v54  ;;  %v461_v46 = vadd.f32 %v456_v15, %v1037_v55 }
  0x74   : >> { %v462_v47 = vadd.f32 %v457_v30, %v1040_v56  ;;  %v464_v48 = vrot.slane %v459_v31, 1  ;;  %v474_v2 = vrot.slane %v459_v31, 6  ;;  %v484_v3 = vrot.slane %v459_v31, 7 }
  0x75   : >> { %v463_v49 = vrot.slane %v458_v44, 1  ;;  %v465_v4 = vrot.slane %v460_v45, 1  ;;  %v466_v5 = vrot.slane %v461_v46, 1  ;;  %v473_v6 = vrot.slane %v458_v44, 6 }
  0x76   : >> { %v467_v50 = vrot.slane %v462_v47, 1  ;;  %v475_v51 = vrot.slane %v460_v45, 6  ;;  %v476_v57 = vrot.slane %v461_v46, 6  ;;  %v477_v58 = vrot.slane %v462_v47, 6 }
  0x77   : >> { %v469_v11 = vsel %vm145_vm0, %v465_v4, %v466_v5  ;;  %v470_v12 = vsel %vm145_vm0, %v464_v48, %v465_v4  ;;  %v471_v63 = vsel %vm145_vm0, %v463_v49, %v464_v48  ;;  %v481_v62 = vsel %vm156_vm1, %v473_v6, %v474_v2 }
  0x78   : >> { %v468_v0 = vsel %vm145_vm0, %v466_v5, %v467_v50  ;;  %v472_v16 = vsel %vm145_vm0, %v467_v50, %v463_v49  ;;  %v478_v17 = vsel %vm156_vm1, %v476_v57, %v477_v58  ;;  %v479_v18 = vsel %vm156_vm1, %v475_v51, %v476_v57 }
  0x79   : >> { %v480_v19 = vsel %vm156_vm1, %v474_v2, %v475_v51  ;;  %v482_v20 = vsel %vm156_vm1, %v477_v58, %v473_v6  ;;  %v483_v21 = vrot.slane %v458_v44, 7  ;;  %v485_v23 = vrot.slane %v460_v45, 7 }
  0x7a   : >> { %v486_v24 = vrot.slane %v461_v46, 7  ;;  %v487_v25 = vrot.slane %v462_v47, 7  ;;  %v493_v26 = vsub.f32 %v471_v63, %v482_v20  ;;  %v494_v28 = vsub.f32 %v470_v12, %v481_v62 }
  0x7b   : >> { %v490_v32 = vsel %vm167_vm2, %v484_v3, %v485_v23  ;;  %v491_v33 = vsel %vm167_vm2, %v483_v21, %v484_v3  ;;  %v495_v60 = vsub.f32 %v469_v11, %v480_v19  ;;  %v496_v34 = vsub.f32 %v468_v0, %v479_v18 }
  0x7c   : >> { %v488_v35 = vsel %vm167_vm2, %v486_v24, %v487_v25  ;;  %v489_v36 = vsel %vm167_vm2, %v485_v23, %v486_v24  ;;  %v492_v37 = vsel %vm167_vm2, %v487_v25, %v483_v21  ;;  %v497_v59 = vsub.f32 %v472_v16, %v478_v17 }
  0x7d   : >> { %v498_v38 = vmul.f32 %v493_v26, %v492_v37  ;;  %v499_v61 = vmul.f32 %v494_v28, %v491_v33  ;;  %v500_v39 = vmul.f32 %v495_v60, %v490_v32  ;;  %v501_v40 = vmul.f32 %v496_v34, %v489_v36 }
  0x7e   : >> { %v502_v41 = vmul.f32 %v497_v59, %v488_v35 }
  0x7f   : >> { %v503_v9 = vsub.f32 %v498_v38, %v458_v44  ;;  %v504_v42 = vsub.f32 %v499_v61, %v459_v31  ;;  %v505_v43 = vsub.f32 %v500_v39, %v460_v45  ;;  %v506_v7 = vsub.f32 %v501_v40, %v461_v46 }
  0x80   : >> { %v507_v13 = vsub.f32 %v502_v41, %v462_v47 }
  0x81   : >> { %v1142_v14 = vadd.f32 8.0, %v503_v9  ;;  %v1144_v15 = vadd.f32 8.0, %v504_v42  ;;  %v1146_v30 = vadd.f32 8.0, %v505_v43  ;;  %v1148_v48 = vadd.f32 8.0, %v506_v7 }
  0x82   : >> { %v1150_v2 = vadd.f32 8.0, %v507_v13 }
  0x83   : >> { %v513_v3 = vmul.f32 0.025, %v1142_v14  ;;  %v514_v49 = vmul.f32 0.025, %v1144_v15  ;;  %v515_v44 = vmul.f32 0.025, %v1146_v30 }
  0x84   : >> { %v516_v31 = vmul.f32 0.025, %v1148_v48  ;;  %v517_v45 = vmul.f32 0.025, %v1150_v2 }
  0x85   : >> { %v518_v46 = vadd.f32 %v513_v3, %v1028_v53  ;;  %v519_v47 = vadd.f32 %v514_v49, %v1031_v52  ;;  %v520_v4 = vadd.f32 %v515_v44, %v1034_v54 }
  0x86   : >> { %v521_v5 = vadd.f32 %v516_v31, %v1037_v55  ;;  %v522_v6 = vadd.f32 %v517_v45, %v1040_v56 }
  0x87   : >> { %v523_v50 = vrot.slane %v518_v46, 1  ;;  %v524_v51 = vrot.slane %v519_v47, 1  ;;  %v525_v57 = vrot.slane %v520_v4, 1  ;;  %v533_v58 = vrot.slane %v518_v46, 6 }
  0x88   : >> { %v526_v11 = vrot.slane %v521_v5, 1  ;;  %v527_v12 = vrot.slane %v522_v6, 1  ;;  %v534_v63 = vrot.slane %v519_v47, 6  ;;  %v535_v62 = vrot.slane %v520_v4, 6 }
  0x89   : >> { %v530_v0 = vsel %vm145_vm0, %v524_v51, %v525_v57  ;;  %v531_v16 = vsel %vm145_vm0, %v523_v50, %v524_v51  ;;  %v536_v17 = vrot.slane %v521_v5, 6  ;;  %v537_v18 = vrot.slane %v522_v6, 6 }
  0x8a   : >> { %v528_v19 = vsel %vm145_vm0, %v526_v11, %v527_v12  ;;  %v529_v20 = vsel %vm145_vm0, %v525_v57, %v526_v11  ;;  %v532_v21 = vsel %vm145_vm0, %v527_v12, %v523_v50  ;;  %v540_v23 = vsel %vm156_vm1, %v534_v63, %v535_v62 }
  0x8b   : >> { %v538_v24 = vsel %vm156_vm1, %v536_v17, %v537_v18  ;;  %v539_v25 = vsel %vm156_vm1, %v535_v62, %v536_v17  ;;  %v541_v26 = vsel %vm156_vm1, %v533_v58, %v534_v63  ;;  %v542_v28 = vsel %vm156_vm1, %v537_v18, %v533_v58 }
  0x8c   : >> { %v543_v32 = vrot.slane %v518_v46, 7  ;;  %v544_v33 = vrot.slane %v519_v47, 7  ;;  %v545_v60 = vrot.slane %v520_v4, 7  ;;  %v546_v34 = vrot.slane %v521_v5, 7 }
  0x8d   : >> { %v547_v35 = vrot.slane %v522_v6, 7  ;;  %v553_v36 = vsub.f32 %v531_v16, %v542_v28  ;;  %v554_v37 = vsub.f32 %v530_v0, %v541_v26  ;;  %v555_v59 = vsub.f32 %v529_v20, %v540_v23 }
  0x8e   : >> { %v549_v38 = vsel %vm167_vm2, %v545_v60, %v546_v34  ;;  %v550_v61 = vsel %vm167_vm2, %v544_v33, %v545_v60  ;;  %v551_v39 = vsel %vm167_vm2, %v543_v32, %v544_v33  ;;  %v556_v40 = vsub.f32 %v528_v19, %v539_v25 }
  0x8f   : >> { %v548_v41 = vsel %vm167_vm2, %v546_v34, %v547_v35  ;;  %v552_v9 = vsel %vm167_vm2, %v547_v35, %v543_v32  ;;  %v557_v42 = vsub.f32 %v532_v21, %v538_v24  ;;  %v559_v43 = vmul.f32 %v554_v37, %v551_v39 }
  0x90   : >> { %v558_v7 = vmul.f32 %v553_v36, %v552_v9  ;;  %v560_v13 = vmul.f32 %v555_v59, %v550_v61  ;;  %v561_v3 = vmul.f32 %v556_v40, %v549_v38 }
  0x91   : >> { %v562_v49 = vmul.f32 %v557_v42, %v548_v41  ;;  %v564_v44 = vsub.f32 %v559_v43, %v519_v47 }
  0x92   : >> { %v563_v31 = vsub.f32 %v558_v7, %v518_v46  ;;  %v565_v45 = vsub.f32 %v560_v13, %v520_v4  ;;  %v566_v50 = vsub.f32 %v561_v3, %v521_v5 }
  0x93   : >> { %v567_v51 = vsub.f32 %v562_v49, %v522_v6  ;;  %v569_v57 = vadd.f32 8.0, %v564_v44 }
  0x94   : >> { %v568_v58 = vadd.f32 8.0, %v563_v31  ;;  %v570_v11 = vadd.f32 8.0, %v565_v45  ;;  %v571_v12 = vadd.f32 8.0, %v566_v50 }
  0x95   : >> { %v572_v63 = vadd.f32 8.0, %v567_v51  ;;  %v574_v62 = vmul.f32 0.05, %v569_v57  ;;  %v639_v18 = vadd.f32 %v569_v57, %v1144_v15 }
  0x96   : >> { %v573_v0 = vmul.f32 0.05, %v568_v58  ;;  %v575_v16 = vmul.f32 0.05, %v570_v11  ;;  %v576_v17 = vmul.f32 0.05, %v571_v12  ;;  %v638_v47 = vadd.f32 %v568_v58, %v1142_v14 }
  0x97   : >> { %v577_v19 = vmul.f32 0.05, %v572_v63  ;;  %v579_v20 = vadd.f32 %v574_v62, %v1031_v52  ;;  %v640_v46 = vadd.f32 %v570_v11, %v1146_v30  ;;  %v641_v21 = vadd.f32 %v571_v12, %v1148_v48 }
  0x98   : >> { %v578_v4 = vadd.f32 %v573_v0, %v1028_v53  ;;  %v580_v5 = vadd.f32 %v575_v16, %v1034_v54  ;;  %v581_v6 = vadd.f32 %v576_v17, %v1037_v55  ;;  %v642_v17 = vadd.f32 %v572_v63, %v1150_v2 }
  0x99   : >> { %v582_v23 = vadd.f32 %v577_v19, %v1040_v56  ;;  %v584_v24 = vrot.slane %v579_v20, 1  ;;  %v594_v25 = vrot.slane %v579_v20, 6  ;;  %v604_v15 = vrot.slane %v579_v20, 7 }
  0x9a   : >> { %v583_v26 = vrot.slane %v578_v4, 1  ;;  %v585_v28 = vrot.slane %v580_v5, 1  ;;  %v586_v32 = vrot.slane %v581_v6, 1  ;;  %v593_v33 = vrot.slane %v578_v4, 6 }
  0x9b   : >> { %v587_v14 = vrot.slane %v582_v23, 1  ;;  %v595_v60 = vrot.slane %v580_v5, 6  ;;  %v596_v30 = vrot.slane %v581_v6, 6  ;;  %v597_v34 = vrot.slane %v582_v23, 6 }
  0x9c   : >> { %v589_v35 = vsel %vm145_vm0, %v585_v28, %v586_v32  ;;  %v590_v36 = vsel %vm145_vm0, %v584_v24, %v585_v28  ;;  %v591_v48 = vsel %vm145_vm0, %v583_v26, %v584_v24  ;;  %v601_v37 = vsel %vm156_vm1, %v593_v33, %v594_v25 }
  0x9d   : >> { %v588_v59 = vsel %vm145_vm0, %v586_v32, %v587_v14  ;;  %v592_v38 = vsel %vm145_vm0, %v587_v14, %v583_v26  ;;  %v598_v61 = vsel %vm156_vm1, %v596_v30, %v597_v34  ;;  %v599_v39 = vsel %vm156_vm1, %v595_v60, %v596_v30 }
  0x9e   : >> { %v600_v40 = vsel %vm156_vm1, %v594_v25, %v595_v60  ;;  %v602_v41 = vsel %vm156_vm1, %v597_v34, %v593_v33  ;;  %v603_v9 = vrot.slane %v578_v4, 7  ;;  %v605_v42 = vrot.slane %v580_v5, 7 }
  0x9f   : >> { %v606_v43 = vrot.slane %v581_v6, 7  ;;  %v607_v7 = vrot.slane %v582_v23, 7  ;;  %v613_v13 = vsub.f32 %v591_v48, %v602_v41  ;;  %v614_v3 = vsub.f32 %v590_v36, %v601_v37 }
  0xa0   : >> { %v610_v49 = vsel %vm167_vm2, %v604_v15, %v605_v42  ;;  %v611_v44 = vsel %vm167_vm2, %v603_v9, %v604_v15  ;;  %v615_v31 = vsub.f32 %v589_v35, %v600_v40  ;;  %v616_v45 = vsub.f32 %v588_v59, %v599_v39 }
  0xa1   : >> { %v608_v50 = vsel %vm167_vm2, %v606_v43, %v607_v7  ;;  %v609_v51 = vsel %vm167_vm2, %v605_v42, %v606_v43  ;;  %v612_v57 = vsel %vm167_vm2, %v607_v7, %v603_v9  ;;  %v617_v58 = vsub.f32 %v592_v38, %v598_v61 }
  0xa2   : >> { %v618_v11 = vmul.f32 %v613_v13, %v612_v57  ;;  %v619_v12 = vmul.f32 %v614_v3, %v611_v44  ;;  %v620_v62 = vmul.f32 %v615_v31, %v610_v49  ;;  %v621_v0 = vmul.f32 %v616_v45, %v609_v51 }
  0xa3   : >> { %v622_v16 = vmul.f32 %v617_v58, %v608_v50  ;;  %v643_v19 = vmul.f32 2.0, %v638_v47  ;;  %v644_v32 = vmul.f32 2.0, %v639_v18  ;;  %v645_v33 = vmul.f32 2.0, %v640_v46 }
  0xa4   : >> { %v623_v24 = vsub.f32 %v618_v11, %v578_v4  ;;  %v624_v25 = vsub.f32 %v619_v12, %v579_v20  ;;  %v625_v15 = vsub.f32 %v620_v62, %v580_v5  ;;  %v626_v26 = vsub.f32 %v621_v0, %v581_v6 }
  0xa5   : >> { %v627_v28 = vsub.f32 %v622_v16, %v582_v23  ;;  %v646_v14 = vmul.f32 2.0, %v641_v21  ;;  %v647_v36 = vmul.f32 2.0, %v642_v17 }
  0xa6   : >> { %v628_v60 = vadd.f32 8.0, %v623_v24  ;;  %v629_v1 = vadd.f32 8.0, %v624_v25  ;;  %v630_v30 = vadd.f32 8.0, %v625_v15  ;;  %v631_v34 = vadd.f32 8.0, %v626_v26 }
  0xa7   : >> { %v632_v35 = vadd.f32 8.0, %v627_v28 }
  0xa8   : >> { %v633_v48 = vadd.f32 %v628_v60, %v1094_v22  ;;  %v634_v2 = vadd.f32 %v629_v1, %v1092_v10  ;;  %v635_v63 = vadd.f32 %v630_v30, %v1096_v29  ;;  %v636_v20 = vadd.f32 %v631_v34, %v1098_v8 }
  0xa9   : >> { %v637_v18 = vadd.f32 %v632_v35, %v1100_v27 }
  0xaa   : >> { %v648_v47 = vadd.f32 %v643_v19, %v633_v48  ;;  %v649_v46 = vadd.f32 %v644_v32, %v634_v2  ;;  %v650_v4 = vadd.f32 %v645_v33, %v635_v63  ;;  %v651_v5 = vadd.f32 %v646_v14, %v636_v20 }
  0xab   : >> { %v652_v6 = vadd.f32 %v647_v36, %v637_v18 }
  0xac   : >> { %v653_v21 = vmul.f32 0.008333334, %v648_v47  ;;  %v654_v23 = vmul.f32 0.008333334, %v649_v46  ;;  %v655_v37 = vmul.f32 0.008333334, %v650_v4 }
  0xad   : >> { %v656_v59 = vmul.f32 0.008333334, %v651_v5  ;;  %v657_v38 = vmul.f32 0.008333334, %v652_v6 }
  0xae   : >> { %v658_v10 = vadd.f32 %v653_v21, %v1028_v53  ;;  %v659_v22 = vadd.f32 %v654_v23, %v1031_v52  ;;  %v660_v29 = vadd.f32 %v655_v37, %v1034_v54  ;;  %129 = sbr.rel (!%p127_p4) target bundleno = 15 (0xf), region = 63 }
  0xaf   : >> { %v661_v8 = vadd.f32 %v656_v59, %v1037_v55  ;;  %v662_v27 = vadd.f32 %v657_v38, %v1040_v56 }
  0xb0   : >> { %664 = vst [vmem:[%s663_s19] sm:$0xff] %v658_v10  ;;  %665 = vst [vmem:[%s663_s19 + $0x8] sm:$0xff] %v659_v22 }
  0xb1   : >> { %666 = vst [vmem:[%s663_s19 + $0x10] sm:$0xff] %v660_v29  ;;  %667 = vst [vmem:[%s663_s19 + $0x18] sm:$0xff] %v661_v8 }
  0xb2   : >> { %668 = vst [vmem:[%s663_s19 + $0x20] sm:$0xff] %v662_v27 }
  0xb3 PF: > { %s11_s6 = sadd.s32 1, %s774_s6  }
  0xb4   : > { %p8_p5 = scmp.ge.s32.totalorder %s11_s6, 4  }
  0xb6   :  { %10 = sbr.rel (!%p8_p5) target bundleno = 1 (0x1), region = 74 }

</bundles_post_ra>
